<compile_context>
chip_gen: v7x
topology: tpu7x:2x2x1
jax: 0.10.0
libtpu: 0.0.40
codegen_flags: <defaults>
</compile_context>

<pallas_src>
import functools
import math

import jax
import jax.numpy as jnp
from jax.experimental import pallas as pl
from jax.experimental.pallas import tpu as pltpu


def _round_up(a, b):
    return ((a + b - 1) // b) * b


def _cosface_kernel(x_ref, w_ref, xinv_ref, winv_ref, o_ref, acc_ref,
                    *, s_cos_m, s_sin_m):
    """Computes one (tm, tn) output tile; contraction streamed along grid axis 2."""
    k = pl.program_id(2)

    @pl.when(k == 0)
    def _():
        acc_ref[...] = jnp.zeros_like(acc_ref)

    # MXU: bf16 feeds, f32 accumulation into the VMEM scratch accumulator.
    acc_ref[...] += jnp.dot(x_ref[...], w_ref[...],
                            preferred_element_type=jnp.float32)

    @pl.when(k == pl.num_programs(2) - 1)
    def _():
        # Epilogue: outer-product normalization, clamp, margin, scale.
        c = acc_ref[...] * xinv_ref[...] * winv_ref[...]          # [tm, tn]
        c = jnp.clip(c, -1.0 + 1e-7, 1.0 - 1e-7)
        sin_theta = jnp.sqrt(1.0 - c * c)                         # > 0 after clamp
        o_ref[...] = (c * s_cos_m - sin_theta * s_sin_m).astype(o_ref.dtype)


def _choose_tk(K, tm_eff, tn_eff, budget_bytes):
    """Whole K when the double-buffered bf16 x/W slabs fit; else a 256-multiple."""
    if 2 * 2 * K * (tm_eff + tn_eff) <= budget_bytes:
        return K
    tk = budget_bytes // (2 * 2 * (tm_eff + tn_eff))
    tk = max(256, (tk // 256) * 256)
    return min(tk, _round_up(K, 256))


def cosface_forward(x, W, s, m, *, tm=256, tn=512,
                    mxu_dtype=jnp.bfloat16, out_dtype=jnp.float32):
    """x: [B, in_dim], W: [in_dim, out_dim] -> [B, out_dim] CosFace logits."""
    B, K = x.shape
    K2, N = W.shape
    assert K == K2, f"in_dim mismatch: {K} vs {K2}"

    # --- tile sizes ---------------------------------------------------------
    tm_eff = min(tm, _round_up(B, 8))                       # sublane multiple
    tn_eff = _round_up(min(tn, _round_up(N, 128)), 128)     # lane multiple
    # Budget for double-buffered bf16 streaming operands (safe on v7x 64 MiB/TC).
    tk_eff = _choose_tk(K, tm_eff, tn_eff, budget_bytes=(16 << 20))

    Bp = _round_up(B, tm_eff)
    Np = _round_up(N, tn_eff)
    Kp = _round_up(K, tk_eff)

    # --- hoisted prep (once per call, f32 originals for exact norms) --------
    x32 = x.astype(jnp.float32)
    w32 = W.astype(jnp.float32)
    x_inv = 1.0 / jnp.maximum(
        jnp.sqrt(jnp.sum(x32 * x32, axis=1, keepdims=True)), 1e-12)   # [B, 1]
    w_inv = 1.0 / jnp.maximum(
        jnp.sqrt(jnp.sum(w32 * w32, axis=0, keepdims=True)), 1e-12)   # [1, N]

    # bf16 streaming operands (norms already taken from f32 above).
    x_mxu = x.astype(mxu_dtype)
    w_mxu = W.astype(mxu_dtype)

    # Zero-pad only when needed: padded rows/cols produce acc = 0 -> finite
    # epilogue values, sliced off at the end.
    if Bp != B or Kp != K:
        x_mxu = jnp.pad(x_mxu, ((0, Bp - B), (0, Kp - K)))
    if Kp != K or Np != N:
        w_mxu = jnp.pad(w_mxu, ((0, Kp - K), (0, Np - N)))
    if Bp != B:
        x_inv = jnp.pad(x_inv, ((0, Bp - B), (0, 0)))
    if Np != N:
        w_inv = jnp.pad(w_inv, ((0, 0), (0, Np - N)))

    # --- explicit VMEM budget (double-buffered bf16 tiles + f32 accumulator) -
    out_bytes = jnp.dtype(out_dtype).itemsize
    est = (2 * (2 * tm_eff * tk_eff + 2 * tk_eff * tn_eff
                + 4 * tm_eff + 4 * tn_eff + out_bytes * tm_eff * tn_eff)
           + 4 * tm_eff * tn_eff + (2 << 20))
    vmem_limit = int(min(max(est, 16 << 20), 40 << 20))

    kernel = functools.partial(
        _cosface_kernel,
        s_cos_m=float(s) * math.cos(m),     # fold s into the trig constants
        s_sin_m=float(s) * math.sin(m),
    )

    # Grid: class tiles outermost (W resident across the inner batch axis when
    # K is whole), batch tiles in the middle, contraction innermost.
    grid = (Np // tn_eff, Bp // tm_eff, Kp // tk_eff)

    out = pl.pallas_call(
        kernel,
        out_shape=jax.ShapeDtypeStruct((Bp, Np), out_dtype),
        grid_spec=pltpu.PrefetchScalarGridSpec(
            num_scalar_prefetch=0,
            grid=grid,
            in_specs=[
                pl.BlockSpec((tm_eff, tk_eff), lambda j, i, k: (i, k)),  # x
                pl.BlockSpec((tk_eff, tn_eff), lambda j, i, k: (k, j)),  # W
                pl.BlockSpec((tm_eff, 1), lambda j, i, k: (i, 0)),       # 1/||x_row||
                pl.BlockSpec((1, tn_eff), lambda j, i, k: (0, j)),       # 1/||W_col||
            ],
            out_specs=pl.BlockSpec((tm_eff, tn_eff), lambda j, i, k: (i, j)),
            scratch_shapes=[pltpu.VMEM((tm_eff, tn_eff), jnp.float32)],
        ),
        compiler_params=pltpu.CompilerParams(
            # Class axis parallel (megacore splits W streaming); batch and K
            # axes arbitrary (W residency / accumulator carried across them).
            dimension_semantics=("parallel", "arbitrary", "arbitrary"),
            vmem_limit_bytes=vmem_limit,
        ),
    )(x_mxu, w_mxu, x_inv, w_inv)

    if Bp != B or Np != N:
        out = out[:B, :N]
    return out


def cosface_reference(x, W, s, m):
    x = x.astype(jnp.float32)
    W = W.astype(jnp.float32)
    x_n = x / jnp.maximum(jnp.linalg.norm(x, axis=1, keepdims=True), 1e-12)
    w_n = W / jnp.maximum(jnp.linalg.norm(W, axis=0, keepdims=True), 1e-12)
    cosine = x_n @ w_n
    theta = jnp.arccos(jnp.clip(cosine, -1.0 + 1e-7, 1.0 - 1e-7))
    return s * jnp.cos(theta + m)


if __name__ == "__main__":
    B, in_dim, out_dim = 8, 32, 16
    s, m = 30.0, 0.40

    key = jax.random.PRNGKey(0)
    kx, kw = jax.random.split(key)

    x = jax.random.normal(kx, (B, in_dim), dtype=jnp.float32)

    # Deterministic kaiming_uniform_ for W of shape (in_dim, out_dim):
    # PyTorch fan_in = W.size(1) = out_dim, gain = sqrt(2), bound = gain*sqrt(3/fan_in)
    bound = math.sqrt(2.0) * math.sqrt(3.0 / out_dim)
    W = jax.random.uniform(kw, (in_dim, out_dim), dtype=jnp.float32,
                           minval=-bound, maxval=bound)

    out = cosface_forward(x, W, s, m)
    out = jax.block_until_ready(out)

    ref = cosface_reference(x, W, s, m)
    assert out.shape == (B, out_dim)
    # bf16 MXU feeds with f32 accumulation: error stays well under 0.1 for
    # outputs in [-s, s] = [-30, 30].
    err = float(jnp.max(jnp.abs(out - ref)))
    assert err < 0.1, f"max abs err {err}"

    print("KERNEL_OK")
</pallas_src>

<mosaic_0001>
module attributes {stable_mosaic.version = 11 : i64} {
  func.func @_cosface_kernel(%arg0: i32, %arg1: i32, %arg2: i32, %arg3: memref<8x32xbf16, #tpu.memory_space<vmem>>, %arg4: memref<32x128xbf16, #tpu.memory_space<vmem>>, %arg5: memref<8x1xf32, #tpu.memory_space<vmem>>, %arg6: memref<1x128xf32, #tpu.memory_space<vmem>>, %arg7: memref<8x128xf32, #tpu.memory_space<vmem>>, %arg8: memref<8x128xf32, #tpu.memory_space<vmem>>) attributes {dimension_semantics = [#tpu.dimension_semantics<parallel>, #tpu.dimension_semantics<arbitrary>, #tpu.dimension_semantics<arbitrary>], iteration_bounds = array<i64: 1, 1, 1>, scalar_prefetch = 0 : i64, scratch_operands = 1 : i64, tpu.core_type = #tpu.core_type<tc>, window_params = [{transform_indices = @transform_0, window_bounds = array<i64: 8, 32>}, {transform_indices = @transform_1, window_bounds = array<i64: 32, 128>}, {transform_indices = @transform_2, window_bounds = array<i64: 8, 1>}, {transform_indices = @transform_3, window_bounds = array<i64: 1, 128>}, {transform_indices = @transform_4, window_bounds = array<i64: 8, 128>}]} {
    %c0_i32 = arith.constant 0 : i32
    %0 = arith.cmpi eq, %arg2, %c0_i32 : i32
    %1 = arith.extui %0 : i1 to i32
    %c0_i32_0 = arith.constant 0 : i32
    %2 = arith.cmpi ne, %1, %c0_i32_0 : i32
    scf.if %2 {
      %cst_10 = arith.constant 0.000000e+00 : f32
      %12 = vector.broadcast %cst_10 : f32 to vector<8x128xf32>
      %c0_11 = arith.constant 0 : index
      %c0_12 = arith.constant 0 : index
      %13 = vector.load %arg8[%c0_11, %c0_12] : memref<8x128xf32, #tpu.memory_space<vmem>>, vector<8x128xf32>
      tpu.vector_store %arg8[%c0_11, %c0_12], %12 {strides = array<i32>} : memref<8x128xf32, #tpu.memory_space<vmem>>, vector<8x128xf32>,
    } else {
    }
    %c0 = arith.constant 0 : index
    %c0_1 = arith.constant 0 : index
    %3 = vector.load %arg8[%c0, %c0_1] : memref<8x128xf32, #tpu.memory_space<vmem>>, vector<8x128xf32>
    %c0_2 = arith.constant 0 : index
    %c0_3 = arith.constant 0 : index
    %4 = vector.load %arg3[%c0_2, %c0_3] : memref<8x32xbf16, #tpu.memory_space<vmem>>, vector<8x32xbf16>
    %c0_4 = arith.constant 0 : index
    %c0_5 = arith.constant 0 : index
    %5 = vector.load %arg4[%c0_4, %c0_5] : memref<32x128xbf16, #tpu.memory_space<vmem>>, vector<32x128xbf16>
    %cst = arith.constant dense<0.000000e+00> : vector<8x128xf32>
    %6 = tpu.matmul %4, %5, %cst {dimension_numbers = #tpu.dot_dimension_numbers<[1], [0], [0], [1], [0, 0, 1, 1], [], []>} : vector<8x32xbf16>, vector<32x128xbf16>, vector<8x128xf32> -> vector<8x128xf32>
    %7 = arith.addf %3, %6 : vector<8x128xf32>
    %c0_6 = arith.constant 0 : index
    %c0_7 = arith.constant 0 : index
    %8 = vector.load %arg8[%c0_6, %c0_7] : memref<8x128xf32, #tpu.memory_space<vmem>>, vector<8x128xf32>
    tpu.vector_store %arg8[%c0_6, %c0_7], %7 {strides = array<i32>} : memref<8x128xf32, #tpu.memory_space<vmem>>, vector<8x128xf32>,
    %c0_i32_8 = arith.constant 0 : i32
    %9 = arith.cmpi eq, %arg2, %c0_i32_8 : i32
    %10 = arith.extui %9 : i1 to i32
    %c0_i32_9 = arith.constant 0 : i32
    %11 = arith.cmpi ne, %10, %c0_i32_9 : i32
    scf.if %11 {
      %c0_10 = arith.constant 0 : index
      %c0_11 = arith.constant 0 : index
      %12 = vector.load %arg8[%c0_10, %c0_11] : memref<8x128xf32, #tpu.memory_space<vmem>>, vector<8x128xf32>
      %c0_12 = arith.constant 0 : index
      %c0_13 = arith.constant 0 : index
      %13 = vector.load %arg5[%c0_12, %c0_13] : memref<8x1xf32, #tpu.memory_space<vmem>>, vector<8x1xf32>
      %14 = vector.broadcast %13 : vector<8x1xf32> to vector<8x128xf32>
      %15 = arith.mulf %12, %14 : vector<8x128xf32>
      %c0_14 = arith.constant 0 : index
      %c0_15 = arith.constant 0 : index
      %16 = vector.load %arg6[%c0_14, %c0_15] : memref<1x128xf32, #tpu.memory_space<vmem>>, vector<1x128xf32>
      %17 = vector.broadcast %16 : vector<1x128xf32> to vector<8x128xf32>
      %18 = arith.mulf %15, %17 : vector<8x128xf32>
      %cst_16 = arith.constant -0.99999988 : f32
      %cst_17 = arith.constant 0.99999988 : f32
      %19 = vector.broadcast %cst_16 : f32 to vector<8x128xf32>
      %20 = arith.maximumf %19, %18 : vector<8x128xf32>
      %21 = vector.broadcast %cst_17 : f32 to vector<8x128xf32>
      %22 = arith.minimumf %21, %20 : vector<8x128xf32>
      %23 = arith.mulf %22, %22 : vector<8x128xf32>
      %cst_18 = arith.constant 1.000000e+00 : f32
      %24 = vector.broadcast %cst_18 : f32 to vector<8x128xf32>
      %25 = arith.subf %24, %23 : vector<8x128xf32>
      %26 = math.sqrt %25 : vector<8x128xf32>
      %cst_19 = arith.constant 27.6318302 : f32
      %27 = vector.broadcast %cst_19 : f32 to vector<8x128xf32>
      %28 = arith.mulf %22, %27 : vector<8x128xf32>
      %cst_20 = arith.constant 11.6825504 : f32
      %29 = vector.broadcast %cst_20 : f32 to vector<8x128xf32>
      %30 = arith.mulf %26, %29 : vector<8x128xf32>
      %31 = arith.subf %28, %30 : vector<8x128xf32>
      %c0_21 = arith.constant 0 : index
      %c0_22 = arith.constant 0 : index
      %32 = vector.load %arg7[%c0_21, %c0_22] : memref<8x128xf32, #tpu.memory_space<vmem>>, vector<8x128xf32>
      tpu.vector_store %arg7[%c0_21, %c0_22], %31 {strides = array<i32>} : memref<8x128xf32, #tpu.memory_space<vmem>>, vector<8x128xf32>,
    } else {
    }
    return
  }
  func.func @transform_0(%arg0: i32, %arg1: i32, %arg2: i32) -> (i32, i32) {
    %c0_i32 = arith.constant 0 : i32
    return %arg1, %arg2 : i32, i32
  }
  func.func @transform_1(%arg0: i32, %arg1: i32, %arg2: i32) -> (i32, i32) {
    %c0_i32 = arith.constant 0 : i32
    return %arg2, %arg0 : i32, i32
  }
  func.func @transform_2(%arg0: i32, %arg1: i32, %arg2: i32) -> (i32, i32) {
    %c0_i32 = arith.constant 0 : i32
    %c0_i32_0 = arith.constant 0 : i32
    return %arg1, %c0_i32 : i32, i32
  }
  func.func @transform_3(%arg0: i32, %arg1: i32, %arg2: i32) -> (i32, i32) {
    %c0_i32 = arith.constant 0 : i32
    %c0_i32_0 = arith.constant 0 : i32
    return %c0_i32, %arg0 : i32, i32
  }
  func.func @transform_4(%arg0: i32, %arg1: i32, %arg2: i32) -> (i32, i32) {
    %c0_i32 = arith.constant 0 : i32
    return %arg1, %arg0 : i32, i32
  }
}

</mosaic_0001>

<bundles_post_ra>
// kernel: tpu_custom_call.1
= control target key start
LH: loop header
LB: loop body
LE: loop exit
PB: predicated region body
PF: predicated region fallthrough
CT: control target
= control target key end

     0   :  { %9 = vsyncpa [#allocation4], 0  ;;  %s292_s0 = inlined_call_operand.vmem [shape: bf16[8,32], index: 0, kind: input, shape index: {}]   ;;  %s293_s1 = inlined_call_operand.hbm [shape: bf16[32,128], index: 1, kind: input, shape index: {}]   ;;  %s294_s2 = inlined_call_operand.vmem [shape: f32[8,1], index: 2, kind: input, shape index: {}]   ;;  %s295_s3 = inlined_call_operand.vmem [shape: f32[1,128], index: 3, kind: input, shape index: {}]   ;;  %s296_s4 = inlined_call_operand.hbm [shape: f32[8,128], index: 4, kind: output, shape index: {}]  }
   0x1   :  { %10 = vsyncpa [#allocation5], 0  ;;  %s227_s15 = smov [#allocation3]   ;;  %s179_s19 = scalar_lea.hbm %s293_s1, 256 }
   0x2   :  { %s18_s16 = sshll.u32 %s227_s15, 4  ;;  %p180_p0 = scmp.ne.s32.totalorder %s293_s1, %s179_s19  ;;  %s19_s16 = int_to_ptr.vmem [resolvable:$true] %s18_s16 }
   0x3   :  { %p183_p1 = scmp.lt.u32.totalorder %s179_s19, %s293_s1 }
   0x5   :  { %p185_p2 = pnand %p183_p1, %p180_p0 }
   0x7   :  { %188 = shalt.err (!%p185_p2)
}
   0x8   :  { %s189_s24 = scalar_lea.vmem %s19_s16, 256  ;;  %p194_p4 = scmp.lt.s32.totalorder %s19_s16, %s19_s16 }
   0x9   :  { %p190_p3 = scmp.ne.s32.totalorder %s19_s16, %s189_s24  ;;  %p195_p5 = scmp.lt.s32.totalorder %s189_s24, %s189_s24 }
   0xb   :  { %p196_p6 = por %p195_p5, %p194_p4 }
   0xd   :  { %p197_p7 = pnand %p196_p6, %p190_p3 }
   0xf   :  { %200 = shalt.err (!%p197_p7)
}
  0x10   :  { %s228_s25 = smov 64   ;;  %s229_s26 = smov 4  }
  0x11   :  { %24 = dma.hbm_to_vmem [thread:$0]  %s293_s1, 256, %s19_s16, [#allocation4], %s228_s25, %s228_s25, %s229_s26  }
  0x12   :  { %223 = dma.done.wait [#allocation4], 256  }
  0x13   :  { %224 = vsyncadd [#allocation4], 4294967040  ;;  %v230_v0 = vmov 0.0   ;;  %vm231_vm0 = vmmov 0   ;;  %v232_v1 = vmov 0   ;;  %v175_v2 = vld [vmem:[#allocation3] sm:$0xff]  }
  0x14   :  { %159 = vmatprep.subr.bf16.mxu0 %v230_v0  ;;  %163 = vmatprep.mubr.msk.bf16.mxu0 %vm231_vm0, %v230_v0  ;;  %v176_v3 = vld [vmem:[#allocation3 + $0x8] sm:$0xff]   ;;  %v106_v4 = vld [vmem:[%s294_s2] sm:$0xff]  ;;  %vm56_vm1 = vcmask 261120  }
  0x15   :  { %174 = vset.pattern.permute.xlu0 %v232_v1  ;;  %160 = vmatpush3.bf16.msra.mxu0 %v175_v2  ;;  %v39_v5 = vld [vmem:[%s292_s0] sm:$0xf]  ;;  %s233_s0 = smov [#allocation6]  }
  0x16   :  { %161 = vmatprep.subr.bf16.mxu0 %v230_v0  ;;  %109 = vperm.xlu0 %174, %v106_v4   ;;  %v154_v8 = vld [vmem:[%s295_s3] ss:$0 sm:$0xff]  ;;  %s142_s2 = sshll.u32 %s233_s0, 4  ;;  %s143_s2 = int_to_ptr.vmem [resolvable:$true] %s142_s2 }
  0x17   :  { %s201_s3 = scalar_lea.vmem %s143_s2, 128  ;;  %p206_p9 = scmp.lt.s32.totalorder %s143_s2, %s143_s2 }
  0x18   :  { %p202_p8 = scmp.ne.s32.totalorder %s143_s2, %s201_s3  ;;  %p207_p10 = scmp.lt.s32.totalorder %s201_s3, %s201_s3 }
  0x19   :  { %162 = vmatpush3.bf16.msra.mxu0 %v176_v3 }
  0x1a   :  { %p208_p11 = por %p207_p10, %p206_p9 }
  0x1c   :  { %164 = vmatmul.mubr.msk.bf16.vlgmr.msra.gmra.mrb[0].mxu0 %vm56_vm1, %v39_v5  ;;  %p209_p12 = pnand %p208_p11, %p202_p8 }
  0x95   :  { %v110_v6 = vpop.permute.xlu0 %109 }
  0xef   :  { %v94_v7 = vpop.f32.mrb[0].mxu0 }
  0xf0   :  { %v112_v9 = vmul.f32 %v110_v6, %v94_v7  ;;  %v165_v10 = vpop.f32.mrb[1].mxu0 }
  0xf1   :  { %v97_v11 = vpop.f32.mrb[2].mxu0 }
  0xf2   :  { %v120_v12 = vmul.f32 %v154_v8, %v112_v9  ;;  %v166_v13 = vpop.f32.mrb[3].mxu0 }
  0xf4   :  { %v155_v14 = vclamps-f32 %v120_v12, 0.9999999 }
  0xf6   :  { %v123_v15 = vmul.f32 %v155_v14, %v155_v14  ;;  %v132_v22 = vmul.f32 27.63183, %v155_v14 }
  0xf8   :  { %v124_v16 = vsub.f32 1.0, %v123_v15 }
  0xfa   :  { %177 = vrsqrt.f32 %v124_v16  ;;  %vm127_vm2 = vcmp.eq.f32.partialorder %v124_v16, inf  ;;  %v130_v19 = vand.u32 2147483648, %v124_v16  ;;  %vm129_vm3 = vcmp.eq.f32.partialorder %v124_v16, 0.0 }
 0x104   :  { %v178_v17 = vpop.eup %177 }
 0x105   :  { %v126_v18 = vmul.f32 %v178_v17, %v124_v16 }
 0x107   :  { %v128_v20 = vsel %vm127_vm2, %v124_v16, %v126_v18 }
 0x108   :  { %v131_v21 = vsel %vm129_vm3, %v130_v19, %v128_v20 }
 0x109   :  { %v133_v23 = vmul.f32 11.68255, %v131_v21 }
 0x10b   :  { %v134_v24 = vsub.f32 %v132_v22, %v133_v23 }
 0x10d   :  { %135 = vst [vmem:[#allocation6] sm:$0xff] %v134_v24 }
 0x10e   :  { %212 = shalt.err (!%p209_p12)
}
 0x10f   :  { %s213_s10 = scalar_lea.hbm %s296_s4, 128 }
 0x110   :  { %p214_p13 = scmp.ne.s32.totalorder %s296_s4, %s213_s10  ;;  %p217_p0 = scmp.lt.u32.totalorder %s213_s10, %s296_s4 }
 0x112   :  { %p219_p1 = pnand %p217_p0, %p214_p13 }
 0x114   :  { %222 = shalt.err (!%p219_p1)
}
 0x115   :  { %145 = dma.vmem_to_hbm [thread:$0]  %s143_s2, 128, %s296_s4, [#allocation5]  }
 0x116   :  { %225 = dma.done.wait [#allocation5], 128  }
 0x117   :  { %226 = vsyncadd [#allocation5], 4294967168 }
 0x118   :  { %149 = vsyncpa [#allocation4], 1 }
 0x119   :  { %150 = vsyncpa [#allocation5], 1 }

</bundles_post_ra>
